<compile_context>
chip_gen: v7x
topology: tpu7x:2x2x1
jax: 0.10.0
libtpu: 0.0.40
codegen_flags: <defaults>
</compile_context>

<pallas_src>
import functools

import numpy as np
import jax
import jax.numpy as jnp
from jax.experimental import pallas as pl
from jax.experimental.pallas import tpu as pltpu

_TWO_PI = float(2.0 * np.pi)
_EPS = 1e-6


def _info_loss_kernel(x_ref, mu_ref, var_ref, part_ref, *, batch, tile_rows):
    i = pl.program_id(0)

    x = x_ref[...].astype(jnp.float32)
    mu = mu_ref[...].astype(jnp.float32)
    var = var_ref[...].astype(jnp.float32)

    needs_mask = (batch % tile_rows) != 0  # static (trace-time) decision
    if needs_mask:
        row = jax.lax.broadcasted_iota(jnp.int32, x.shape, 0) + i * tile_rows
        valid = row < batch
        # Keep padded rows finite (no log/div blowups), they get zeroed below.
        var = jnp.where(valid, var, 1.0)
        x = jnp.where(valid, x, 0.0)
        mu = jnp.where(valid, mu, 0.0)

    diff = x - mu
    logli = (-0.5 * jnp.log(var * _TWO_PI + _EPS)
             - diff * diff / (var * 2.0 + _EPS))

    if needs_mask:
        logli = jnp.where(valid, logli, 0.0)

    # Reduce only over the sublane (row) axis: the bulk is plain VALU vreg
    # adds.  The expensive cross-lane reduction is deferred to JAX outside.
    part_ref[...] = jnp.sum(logli, axis=0, keepdims=True)[None]   # (1, 1, D)


def _pick_tile_rows(batch, feat, vmem_budget_bytes=24 * 1024 * 1024):
    """Largest row tile (multiple of 8) with 3 inputs x 2 buffers in budget."""
    tb = vmem_budget_bytes // (3 * 2 * feat * 4)
    tb = max(8, (tb // 8) * 8)
    tb = min(tb, 2048)                          # keep per-step DMA reasonable
    padded_batch = ((batch + 7) // 8) * 8
    return min(tb, padded_batch)


def info_loss(x, mu, var, tile_rows=None):
    """Pallas implementation of InfoLoss.forward(x, mu, var) -> scalar."""
    assert x.shape == mu.shape == var.shape
    B, D = x.shape
    TB = _pick_tile_rows(B, D) if tile_rows is None else tile_rows
    num_tiles = pl.cdiv(B, TB)

    kernel = functools.partial(_info_loss_kernel, batch=B, tile_rows=TB)

    itemsize = jnp.dtype(x.dtype).itemsize
    cost = pl.CostEstimate(
        flops=10 * B * D,
        transcendentals=B * D,
        bytes_accessed=3 * B * D * itemsize + num_tiles * D * 4,
    )

    partials = pl.pallas_call(
        kernel,
        out_shape=jax.ShapeDtypeStruct((num_tiles, 1, D), jnp.float32),
        grid=(num_tiles,),
        in_specs=[
            pl.BlockSpec((TB, D), lambda i: (i, 0)),
            pl.BlockSpec((TB, D), lambda i: (i, 0)),
            pl.BlockSpec((TB, D), lambda i: (i, 0)),
        ],
        out_specs=pl.BlockSpec((1, 1, D), lambda i: (i, 0, 0)),
        compiler_params=pltpu.CompilerParams(
            dimension_semantics=("parallel",),
            vmem_limit_bytes=32 * 1024 * 1024,
        ),
        cost_estimate=cost,
    )(x, mu, var)

    # Final cross-lane / cross-tile reduce, batch mean and negation in JAX.
    return -(jnp.sum(partials) / jnp.float32(B))


def info_loss_ref(x, mu, var):
    """Pure-JAX reference mirroring the PyTorch forward."""
    logli = (-0.5 * jnp.log(var * _TWO_PI + _EPS)
             - (x - mu) ** 2 / (var * 2.0 + _EPS))
    return -jnp.mean(jnp.sum(logli, axis=1))


if __name__ == "__main__":
    key = jax.random.PRNGKey(0)

    # Case 1: small, exact-tile shape.
    kx, kmu, kvar = jax.random.split(key, 3)
    B, D = 8, 128
    x = jax.random.normal(kx, (B, D), dtype=jnp.float32)
    mu = jax.random.normal(kmu, (B, D), dtype=jnp.float32)
    var = jax.nn.softplus(jax.random.normal(kvar, (B, D), dtype=jnp.float32)) + 0.1

    out = jax.block_until_ready(info_loss(x, mu, var))
    ref = jax.block_until_ready(info_loss_ref(x, mu, var))
    assert np.allclose(np.asarray(out), np.asarray(ref), rtol=1e-4, atol=1e-4), (out, ref)

    # Case 2: multiple tiles + ragged tail (exercises masking / parallel grid).
    kx2, kmu2, kvar2 = jax.random.split(jax.random.fold_in(key, 1), 3)
    B2, D2 = 50, 256
    x2 = jax.random.normal(kx2, (B2, D2), dtype=jnp.float32)
    mu2 = jax.random.normal(kmu2, (B2, D2), dtype=jnp.float32)
    var2 = jax.nn.softplus(jax.random.normal(kvar2, (B2, D2), dtype=jnp.float32)) + 0.1

    out2 = jax.block_until_ready(info_loss(x2, mu2, var2, tile_rows=16))
    ref2 = jax.block_until_ready(info_loss_ref(x2, mu2, var2))
    assert np.allclose(np.asarray(out2), np.asarray(ref2), rtol=1e-4, atol=1e-4), (out2, ref2)

    print("KERNEL_OK")
</pallas_src>

<mosaic_0001>
module attributes {stable_mosaic.version = 11 : i64} {
  func.func @_info_loss_kernel(%arg0: i32, %arg1: memref<8x128xf32, #tpu.memory_space<vmem>>, %arg2: memref<8x128xf32, #tpu.memory_space<vmem>>, %arg3: memref<8x128xf32, #tpu.memory_space<vmem>>, %arg4: memref<1x1x128xf32, #tpu.memory_space<vmem>>) attributes {dimension_semantics = [#tpu.dimension_semantics<parallel>], iteration_bounds = array<i64: 1>, scalar_prefetch = 0 : i64, scratch_operands = 0 : i64, tpu.core_type = #tpu.core_type<tc>, window_params = [{transform_indices = @transform_0, window_bounds = array<i64: 8, 128>}, {transform_indices = @transform_1, window_bounds = array<i64: 8, 128>}, {transform_indices = @transform_2, window_bounds = array<i64: 8, 128>}, {transform_indices = @transform_3, window_bounds = array<i64: 1, 1, 128>}]} {
    %c0 = arith.constant 0 : index
    %c0_0 = arith.constant 0 : index
    %0 = vector.load %arg1[%c0, %c0_0] : memref<8x128xf32, #tpu.memory_space<vmem>>, vector<8x128xf32>
    %c0_1 = arith.constant 0 : index
    %c0_2 = arith.constant 0 : index
    %1 = vector.load %arg2[%c0_1, %c0_2] : memref<8x128xf32, #tpu.memory_space<vmem>>, vector<8x128xf32>
    %c0_3 = arith.constant 0 : index
    %c0_4 = arith.constant 0 : index
    %2 = vector.load %arg3[%c0_3, %c0_4] : memref<8x128xf32, #tpu.memory_space<vmem>>, vector<8x128xf32>
    %3 = arith.subf %0, %1 : vector<8x128xf32>
    %cst = arith.constant 6.28318548 : f32
    %4 = vector.broadcast %cst : f32 to vector<8x128xf32>
    %5 = arith.mulf %2, %4 : vector<8x128xf32>
    %cst_5 = arith.constant 9.99999997E-7 : f32
    %6 = vector.broadcast %cst_5 : f32 to vector<8x128xf32>
    %7 = arith.addf %5, %6 : vector<8x128xf32>
    %8 = math.log %7 : vector<8x128xf32>
    %cst_6 = arith.constant -5.000000e-01 : f32
    %9 = vector.broadcast %cst_6 : f32 to vector<8x128xf32>
    %10 = arith.mulf %9, %8 : vector<8x128xf32>
    %11 = arith.mulf %3, %3 : vector<8x128xf32>
    %cst_7 = arith.constant 2.000000e+00 : f32
    %12 = vector.broadcast %cst_7 : f32 to vector<8x128xf32>
    %13 = arith.mulf %2, %12 : vector<8x128xf32>
    %cst_8 = arith.constant 9.99999997E-7 : f32
    %14 = vector.broadcast %cst_8 : f32 to vector<8x128xf32>
    %15 = arith.addf %13, %14 : vector<8x128xf32>
    %16 = arith.divf %11, %15 : vector<8x128xf32>
    %17 = arith.subf %10, %16 : vector<8x128xf32>
    %cst_9 = arith.constant dense<0.000000e+00> : vector<128xf32>
    %18 = vector.multi_reduction <add>, %17, %cst_9 [0] : vector<8x128xf32> to vector<128xf32>
    %19 = vector.shape_cast %18 : vector<128xf32> to vector<1x128xf32>
    %20 = vector.shape_cast %19 : vector<1x128xf32> to vector<1x1x128xf32>
    %c0_10 = arith.constant 0 : index
    %c0_11 = arith.constant 0 : index
    %c0_12 = arith.constant 0 : index
    %21 = vector.load %arg4[%c0_10, %c0_11, %c0_12] : memref<1x1x128xf32, #tpu.memory_space<vmem>>, vector<1x1x128xf32>
    tpu.vector_store %arg4[%c0_10, %c0_11, %c0_12], %20 {strides = array<i32>} : memref<1x1x128xf32, #tpu.memory_space<vmem>>, vector<1x1x128xf32>,
    return
  }
  func.func @transform_0(%arg0: i32) -> (i32, i32) {
    %c0_i32 = arith.constant 0 : i32
    %c0_i32_0 = arith.constant 0 : i32
    return %arg0, %c0_i32 : i32, i32
  }
  func.func @transform_1(%arg0: i32) -> (i32, i32) {
    %c0_i32 = arith.constant 0 : i32
    %c0_i32_0 = arith.constant 0 : i32
    return %arg0, %c0_i32 : i32, i32
  }
  func.func @transform_2(%arg0: i32) -> (i32, i32) {
    %c0_i32 = arith.constant 0 : i32
    %c0_i32_0 = arith.constant 0 : i32
    return %arg0, %c0_i32 : i32, i32
  }
  func.func @transform_3(%arg0: i32) -> (i32, i32, i32) {
    %c0_i32 = arith.constant 0 : i32
    %c0_i32_0 = arith.constant 0 : i32
    %c0_i32_1 = arith.constant 0 : i32
    return %arg0, %c0_i32, %c0_i32_0 : i32, i32, i32
  }
}

</mosaic_0001>

<bundles_post_ra>
// kernel: tpu_custom_call.1
= control target key start
LH: loop header
LB: loop body
LE: loop exit
PB: predicated region body
PF: predicated region fallthrough
CT: control target
= control target key end

     0   :  { %8 = vsyncpa [#allocation3], 0  ;;  %s262_s0 = inlined_call_operand.hbm [shape: f32[8,128], index: 0, kind: input, shape index: {}]   ;;  %s263_s1 = inlined_call_operand.hbm [shape: f32[8,128], index: 1, kind: input, shape index: {}]   ;;  %s264_s2 = inlined_call_operand.hbm [shape: f32[8,128], index: 2, kind: input, shape index: {}]   ;;  %s265_s3 = inlined_call_operand.hbm [shape: f32[1,1,128], index: 3, kind: output, shape index: {}]  }
   0x1   :  { %9 = vsyncpa [#allocation6], 0 }
   0x2   :  { %10 = vsyncpa [#allocation4], 0  ;;  %s190_s12 = smov [#allocation5]   ;;  %s191_s14 = smov [#allocation2]  }
   0x3   :  { %s27_s13 = sshll.u32 %s190_s12, 4  ;;  %s17_s15 = sshll.u32 %s191_s14, 4  ;;  %s28_s13 = int_to_ptr.vmem [resolvable:$true] %s27_s13  ;;  %s18_s15 = int_to_ptr.vmem [resolvable:$true] %s17_s15 }
   0x4   :  { %s96_s18 = scalar_lea.hbm %s263_s1, 128 }
   0x5   :  { %p97_p0 = scmp.ne.s32.totalorder %s263_s1, %s96_s18  ;;  %p100_p1 = scmp.lt.u32.totalorder %s96_s18, %s263_s1 }
   0x7   :  { %p102_p2 = pnand %p100_p1, %p97_p0 }
   0x9   :  { %105 = shalt.err (!%p102_p2)
}
   0xa   :  { %s106_s23 = scalar_lea.vmem %s28_s13, 128  ;;  %p111_p4 = scmp.lt.s32.totalorder %s28_s13, %s28_s13 }
   0xb   :  { %p107_p3 = scmp.ne.s32.totalorder %s28_s13, %s106_s23  ;;  %p112_p5 = scmp.lt.s32.totalorder %s106_s23, %s106_s23 }
   0xd   :  { %p113_p6 = por %p112_p5, %p111_p4 }
   0xf   :  { %p114_p7 = pnand %p113_p6, %p107_p3 }
  0x11   :  { %117 = shalt.err (!%p114_p7)
}
  0x12   :  { %30 = dma.hbm_to_vmem [thread:$0]  %s263_s1, 128, %s28_s13, [#allocation6]  }
  0x13   :  { %s118_s28 = scalar_lea.hbm %s262_s0, 128 }
  0x14   :  { %p119_p8 = scmp.ne.s32.totalorder %s262_s0, %s118_s28  ;;  %p122_p9 = scmp.lt.u32.totalorder %s118_s28, %s262_s0 }
  0x16   :  { %p124_p10 = pnand %p122_p9, %p119_p8 }
  0x18   :  { %127 = shalt.err (!%p124_p10)
}
  0x19   :  { %s128_s6 = scalar_lea.vmem %s18_s15, 128  ;;  %p133_p12 = scmp.lt.s32.totalorder %s18_s15, %s18_s15 }
  0x1a   :  { %p129_p11 = scmp.ne.s32.totalorder %s18_s15, %s128_s6  ;;  %p134_p13 = scmp.lt.s32.totalorder %s128_s6, %s128_s6 }
  0x1c   :  { %p135_p0 = por %p134_p13, %p133_p12 }
  0x1e   :  { %p136_p1 = pnand %p135_p0, %p129_p11 }
  0x20   :  { %139 = shalt.err (!%p136_p1)
}
  0x21   :  { %20 = dma.hbm_to_vmem [thread:$0]  %s262_s0, 128, %s18_s15, [#allocation3]  }
  0x22   :  { %s192_s8 = smov [#allocation7]   ;;  %s140_s12 = scalar_lea.hbm %s264_s2, 128 }
  0x23   :  { %s37_s9 = sshll.u32 %s192_s8, 4  ;;  %p141_p2 = scmp.ne.s32.totalorder %s264_s2, %s140_s12  ;;  %s38_s9 = int_to_ptr.vmem [resolvable:$true] %s37_s9 }
  0x24   :  { %p144_p3 = scmp.lt.u32.totalorder %s140_s12, %s264_s2 }
  0x26   :  { %p146_p4 = pnand %p144_p3, %p141_p2 }
  0x28   :  { %149 = shalt.err (!%p146_p4)
}
  0x29   :  { %s150_s18 = scalar_lea.vmem %s38_s9, 128  ;;  %p155_p6 = scmp.lt.s32.totalorder %s38_s9, %s38_s9 }
  0x2a   :  { %p151_p5 = scmp.ne.s32.totalorder %s38_s9, %s150_s18  ;;  %p156_p7 = scmp.lt.s32.totalorder %s150_s18, %s150_s18 }
  0x2c   :  { %p157_p8 = por %p156_p7, %p155_p6 }
  0x2e   :  { %p158_p9 = pnand %p157_p8, %p151_p5 }
  0x30   :  { %161 = shalt.err (!%p158_p9)
}
  0x31   :  { %40 = dma.hbm_to_vmem [thread:$0]  %s264_s2, 128, %s38_s9, [#allocation6]  }
  0x32   :  { %184 = dma.done.wait [#allocation3], 128  }
  0x33   :  { %185 = vsyncadd [#allocation3], 4294967168 }
  0x34   :  { %186 = dma.done.wait [#allocation6], 256  }
  0x35   :  { %187 = vsyncadd [#allocation6], 4294967040  ;;  %v52_v0 = vld [vmem:[#allocation7] sm:$0xff]  ;;  %v50_v5 = vld [vmem:[#allocation2] sm:$0xff]  ;;  %s193_s2 = smov [#allocation8]  }
  0x36   :  { %v54_v1 = vmul.f32 6.2831855, %v52_v0  ;;  %v60_v2 = vmul.f32 2.0, %v52_v0  ;;  %v51_v6 = vld [vmem:[#allocation5] sm:$0xff]  ;;  %s78_s19 = sshll.u32 %s193_s2, 4  ;;  %s79_s19 = int_to_ptr.vmem [resolvable:$true] %s78_s19 }
  0x37   :  { %v53_v7 = vsub.f32 %v50_v5, %v51_v6  ;;  %s162_s20 = scalar_lea.vmem %s79_s19, 16  ;;  %s166_s21 = scalar_lea.vmem %s79_s19, 32 }
  0x38   :  { %v55_v3 = vadd.f32 1e-06, %v54_v1  ;;  %v61_v4 = vadd.f32 1e-06, %v60_v2  ;;  %p163_p10 = scmp.ne.s32.totalorder %s79_s19, %s162_s20  ;;  %p167_p11 = scmp.lt.s32.totalorder %s79_s19, %s79_s19 }
  0x39   :  { %v59_v8 = vmul.f32 %v53_v7, %v53_v7  ;;  %p168_p12 = scmp.lt.s32.totalorder %s166_s21, %s162_s20 }
  0x3a   :  { %92 = vlog2.f32 %v55_v3 }
  0x3b   :  { %94 = vrcp.f32 %v61_v4  ;;  %p169_p13 = por %p168_p12, %p167_p11 }
  0x3d   :  { %p170_p0 = pnand %p169_p13, %p163_p10 }
  0x44   :  { %v93_v9 = vpop.eup %92 }
  0x45   :  { %v95_v10 = vpop.eup %94  ;;  %v57_v11 = vmul.f32 0.6931472, %v93_v9 }
  0x46   :  { %v63_v12 = vmul.f32 %v95_v10, %v59_v8 }
  0x47   :  { %v58_v13 = vmul.f32 -0.5, %v57_v11 }
  0x49   :  { %v64_v14 = vsub.f32 %v58_v13, %v63_v12 }
  0x4b   :  { %v65_v15 = vrot.slane %v64_v14, 4 }
  0x4d   :  { %v66_v16 = vadd.f32 %v65_v15, %v64_v14 }
  0x4f   :  { %v67_v17 = vrot.slane %v66_v16, 2 }
  0x51   :  { %v68_v18 = vadd.f32 %v67_v17, %v66_v16 }
  0x53   :  { %v69_v19 = vrot.slane %v68_v18, 1 }
  0x55   :  { %v70_v20 = vadd.f32 %v69_v19, %v68_v18 }
  0x57   :  { %71 = vst [vmem:[#allocation8] sm:$0x1] %v70_v20 }
  0x58   :  { %173 = shalt.err (!%p170_p0)
}
  0x59   :  { %s174_s24 = scalar_lea.hbm %s265_s3, 16 }
  0x5a   :  { %p175_p1 = scmp.ne.s32.totalorder %s265_s3, %s174_s24  ;;  %p178_p2 = scmp.lt.u32.totalorder %s174_s24, %s265_s3 }
  0x5c   :  { %p180_p3 = pnand %p178_p2, %p175_p1 }
  0x5e   :  { %183 = shalt.err (!%p180_p3)
}
  0x5f   :  { %81 = dma.vmem_to_hbm [thread:$0]  %s79_s19, 16, %s265_s3, [#allocation4]  }
  0x60   :  { %188 = dma.done.wait [#allocation4], 16  }
  0x61   :  { %189 = vsyncadd [#allocation4], 4294967280 }
  0x62   :  { %85 = vsyncpa [#allocation3], 1 }
  0x63   :  { %86 = vsyncpa [#allocation6], 1 }
  0x64   :  { %87 = vsyncpa [#allocation4], 1 }

</bundles_post_ra>
